<compile_context>
chip_gen: v7x
topology: tpu7x:2x2x1
jax: 0.10.0
libtpu: 0.0.40
codegen_flags: <defaults>
</compile_context>

<pallas_src>
import jax
import jax.numpy as jnp
from jax.experimental import pallas as pl
from jax.experimental.pallas import tpu as pltpu


# ----------------------------------------------------------------------------
# Deterministic parameter init (mirrors MockComplexModel.__init__).
# These are not used in forward() — kept only for fidelity with the module.
# ----------------------------------------------------------------------------
def init_params():
    bias = jnp.ones((2,), dtype=jnp.float16)    # torch.nn.Parameter(torch.ones(2, fp16))
    weight = jnp.ones((2,), dtype=jnp.float32)  # torch.nn.Parameter(torch.ones(2, fp32))
    return {"_bias": bias, "_weight": weight}


# ----------------------------------------------------------------------------
# Pallas kernel: identity as a single HBM -> HBM DMA (no VMEM round trip).
# ----------------------------------------------------------------------------
def _dma_identity_kernel(x_hbm_ref, o_hbm_ref, sem):
    cp = pltpu.make_async_copy(x_hbm_ref, o_hbm_ref, sem)
    cp.start()
    cp.wait()


def pallas_identity_copy(data: jax.Array) -> jax.Array:
    """Explicit identity copy of `data` via one HBM->HBM DMA.

    Only use this when a materialized copy is actually required (e.g. to
    benchmark the copy); the module's forward pass itself should not launch
    any kernel — see mock_complex_model_forward below.
    """
    nbytes = data.size * jnp.dtype(data.dtype).itemsize
    return pl.pallas_call(
        _dma_identity_kernel,
        out_shape=jax.ShapeDtypeStruct(data.shape, data.dtype),
        in_specs=[pl.BlockSpec(memory_space=pl.ANY)],   # stay in HBM, no auto-DMA
        out_specs=pl.BlockSpec(memory_space=pl.ANY),    # output lives in HBM too
        scratch_shapes=[pltpu.SemaphoreType.DMA(())],
        cost_estimate=pl.CostEstimate(
            flops=0, transcendentals=0, bytes_accessed=2 * nbytes
        ),
    )(data)


# ----------------------------------------------------------------------------
# Module forward: identity. No kernel launch (top perf recommendation).
# ----------------------------------------------------------------------------
def mock_complex_model_forward(params, data: jax.Array) -> jax.Array:
    """Equivalent of MockComplexModel.forward(data) -> data (identity).

    `params` is accepted for API parity with the torch module but unused,
    exactly as in the reference forward pass. Returning `data` directly means
    zero HBM traffic; with jax.jit donation the output aliases the input.
    """
    del params  # unused in forward, matching the PyTorch module
    return data


if __name__ == "__main__":
    key = jax.random.PRNGKey(0)
    params = init_params()

    # Small NCHW input consistent with the module's test usage.
    x = jax.random.normal(key, (2, 4, 16, 16), dtype=jnp.float32)

    # 1) Module forward: pure identity, no Pallas launch.
    y = jax.block_until_ready(mock_complex_model_forward(params, x))
    assert y.shape == x.shape and y.dtype == x.dtype
    assert bool(jnp.all(y == x))

    # 2) Explicit Pallas HBM->HBM DMA copy kernel, run once and verified.
    y_copy = jax.block_until_ready(jax.jit(pallas_identity_copy)(x))
    assert y_copy.shape == x.shape and y_copy.dtype == x.dtype
    assert bool(jnp.all(y_copy == x))

    print("KERNEL_OK")
</pallas_src>

<mosaic_0001>
module attributes {stable_mosaic.version = 11 : i64} {
  func.func @_dma_identity_kernel(%arg0: memref<2x4x16x16xf32, #tpu.memory_space<any>>, %arg1: memref<2x4x16x16xf32, #tpu.memory_space<any>>, %arg2: memref<!tpu.dma_semaphore, #tpu.memory_space<semaphore_mem>>) attributes {dimension_semantics = [], scalar_prefetch = 0 : i64, scratch_operands = 1 : i64, tpu.core_type = #tpu.core_type<tc>} {
    tpu.enqueue_dma source(%arg0 : memref<2x4x16x16xf32, #tpu.memory_space<any>>) target(%arg1 : memref<2x4x16x16xf32, #tpu.memory_space<any>>) target_semaphore(%arg2 : memref<!tpu.dma_semaphore, #tpu.memory_space<semaphore_mem>>)
    tpu.wait_dma2 semaphore(%arg2 : memref<!tpu.dma_semaphore, #tpu.memory_space<semaphore_mem>>) src(%arg0 : memref<2x4x16x16xf32, #tpu.memory_space<any>>) dst(%arg1 : memref<2x4x16x16xf32, #tpu.memory_space<any>>)
    return
  }
}

</mosaic_0001>

<bundles_post_ra>
// kernel: pallas_identity_copy.1
= control target key start
LH: loop header
LB: loop body
LE: loop exit
PB: predicated region body
PF: predicated region fallthrough
CT: control target
= control target key end

     0   :  { %s36_s6 = smov [#allocation2]   ;;  %s37_s7 = smov [#allocation3]   ;;  %s55_s0 = inlined_call_operand.hbm [shape: f32[2,4,16,16], index: 0, kind: input, shape index: {}]   ;;  %s56_s1 = inlined_call_operand.hbm [shape: f32[2,4,16,16], index: 1, kind: output, shape index: {}]  }
   0x1   :  { %s38_s8 = smov 0  }
   0x2   :  { %18 = dma.general %s55_s0, 2048, %s56_s1, %s36_s6, %s37_s7, [#allocation4], %s38_s8, 0  }
   0x3   :  { %34 = dma.done.wait [#allocation2], 2048 }
   0x4   :  { %35 = vsyncadd [#allocation2], 4294965248 }
   0x5   :  { %24 = vsyncmov [#allocation2] }
   0x8   :  { %s25_s13 = vpop.sfrf %24 }
   0x9   :  { %p30_p0 = scmp.ne.s32.totalorder %s25_s13, 0 }
   0xb   :  { %29 = shalt.err (%p30_p0)  }

</bundles_post_ra>
